<compile_context>
chip_gen: v7x
topology: tpu7x:2x2x1
jax: 0.10.0
libtpu: 0.0.40
codegen_flags: <defaults>
</compile_context>

<pallas_src>
import math
import functools

import jax
import jax.numpy as jnp
from jax import lax
from jax.experimental import pallas as pl
from jax.experimental.pallas import tpu as pltpu

# ---- module-level constants (undefined globals in the PyTorch spec) ----
DROPOUT_P = 0.0  # p = 0 -> dropout is the identity (deterministic)


def _sdpa_kernel(x1_ref, x2_ref, o_ref, *, scale_factor):
    # One grid step handles G (batch*head) slices: input blocks are (G, S, D).
    q = x1_ref[...]        # (G, S, D), input dtype
    kv = x2_ref[...]       # (G, S, D), input dtype

    # scores[g, i, j] = sum_d q[g, i, d] * kv[g, j, d]
    # Batched contraction over the last dim of both operands -> no kv.T is
    # materialized; MXU accumulates in f32.
    s = lax.dot_general(
        q, kv,
        dimension_numbers=(((2,), (2,)), ((0,), (0,))),
        preferred_element_type=jnp.float32,
    )  # (G, S, S) f32

    # Scale the f32 scores (same op ordering as torch: qk.mul(scale_factor)).
    s = s * jnp.float32(scale_factor)

    # Numerically stable softmax, fully in f32, exact normalization.
    m = jnp.max(s, axis=-1, keepdims=True)
    e = jnp.exp(s - m)
    p = e / jnp.sum(e, axis=-1, keepdims=True)

    # dropout(p=0.0) on x1 and on the probabilities is an exact identity.

    # out[g, i, d] = sum_j p[g, i, j] * kv[g, j, d]
    out = lax.dot_general(
        p.astype(kv.dtype), kv,
        dimension_numbers=(((2,), (1,)), ((0,), (0,))),
        preferred_element_type=jnp.float32,
    )  # (G, S, D) f32

    # Store lane-dense: o_ref is either (1, G, S*D) (packed, D < 128) or
    # (G, S, D) (already lane-dense).  The reshape is layout plumbing only.
    o_ref[...] = out.astype(o_ref.dtype).reshape(o_ref.shape)


def _vmem_budget_and_limit():
    """Per-block VMEM budget and scoped-VMEM limit, generation aware."""
    cap = None
    try:
        info = pltpu.get_tpu_info()
        cap = int(getattr(info, "vmem_capacity_bytes", 0)) or None
    except Exception:
        cap = None
    if cap is None:
        # Conservative: fits v5e's 16 MiB default scoped VMEM without any
        # compiler-params override.
        return 8 << 20, None
    # Quarter of physical VMEM for the working set; raise the scoped limit to
    # ~70% of physical so double-buffered blocks + f32 temporaries have room.
    return cap // 4, int(cap * 0.7)


def _choose_group(bh, s, d, in_itemsize, out_itemsize, budget_bytes):
    """How many (batch*head) slices are processed per grid step.

    Prefer a single grid step (the whole problem as one block) whenever it
    fits the VMEM budget — per-grid-step pipeline overhead (~0.35us) dwarfs
    the compute at small shapes on single-TC v5e/v6e.  The budget counts the
    double-buffered input/output blocks *and* the in-kernel f32 temporaries
    (scores chain s/e/p plus the f32 out), which dominate once S grows.
    """
    blk = s * d * (2 * in_itemsize + out_itemsize)       # q, kv, out blocks
    per_head = (2 * blk                                   # ~double buffered
                + 3 * s * s * 4                           # s, e, p in f32
                + s * d * 4)                              # f32 out temp
    g = max(1, min(bh, budget_bytes // max(per_head, 1)))
    while bh % g:  # keep every block full-sized
        g -= 1
    return g


def sdpa_pallas(x1, x2, *, scale_factor=None, dropout_p=DROPOUT_P):
    assert x1.shape == x2.shape and x1.ndim == 4
    assert dropout_p == 0.0, "only deterministic p=0 dropout supported here"
    B, H, S, D = x1.shape
    if scale_factor is None:
        scale_factor = 1.0 / math.sqrt(D)

    # Free wrapper-side reshape: collapse (B, H) into one axis.
    BH = B * H
    x1f = x1.reshape(BH, S, D)
    x2f = x2.reshape(BH, S, D)

    itemsize = jnp.dtype(x1.dtype).itemsize
    budget, vmem_limit = _vmem_budget_and_limit()
    G = _choose_group(BH, S, D, itemsize, itemsize, budget)
    num_steps = BH // G

    # Lane-dense output slab when D is not already a multiple of 128.
    pack_lanes = (D % 128) != 0
    if pack_lanes:
        out_shape = jax.ShapeDtypeStruct((num_steps, G, S * D), x1.dtype)
        out_spec = pl.BlockSpec((1, G, S * D), lambda i: (i, 0, 0))
    else:
        out_shape = jax.ShapeDtypeStruct((BH, S, D), x1.dtype)
        out_spec = pl.BlockSpec((G, S, D), lambda i: (i, 0, 0))

    cp_kwargs = dict(dimension_semantics=("parallel",))
    if vmem_limit is not None:
        cp_kwargs["vmem_limit_bytes"] = vmem_limit

    kernel = functools.partial(_sdpa_kernel, scale_factor=scale_factor)

    out = pl.pallas_call(
        kernel,
        out_shape=out_shape,
        grid_spec=pltpu.PrefetchScalarGridSpec(
            num_scalar_prefetch=0,
            grid=(num_steps,),
            in_specs=[
                pl.BlockSpec((G, S, D), lambda i: (i, 0, 0)),
                pl.BlockSpec((G, S, D), lambda i: (i, 0, 0)),
            ],
            out_specs=out_spec,
        ),
        compiler_params=pltpu.CompilerParams(**cp_kwargs),
    )(x1f, x2f)

    # Contiguous (free) reshape back to the module's output layout.
    return out.reshape(B, H, S, D)


def sdpa_reference(x1, x2, *, scale_factor=None):
    D = x1.shape[-1]
    if scale_factor is None:
        scale_factor = 1.0 / math.sqrt(D)
    qk = jnp.einsum("bhsd,bhtd->bhst", x1, x2,
                    precision=lax.Precision.HIGHEST) * scale_factor
    p = jax.nn.softmax(qk, axis=-1)
    return jnp.einsum("bhst,bhtd->bhsd", p, x2,
                      precision=lax.Precision.HIGHEST)


if __name__ == "__main__":
    key = jax.random.PRNGKey(0)
    k1, k2 = jax.random.split(key)

    # Small shapes consistent with the module: batch=2, heads=4, seq=8, hidden=32
    B, H, S, D = 2, 4, 8, 32
    x1 = jax.random.normal(k1, (B, H, S, D), dtype=jnp.float32)
    x2 = jax.random.normal(k2, (B, H, S, D), dtype=jnp.float32)

    out = sdpa_pallas(x1, x2)
    out = jax.block_until_ready(out)

    ref = sdpa_reference(x1, x2)
    assert out.shape == (B, H, S, D)
    max_err = float(jnp.max(jnp.abs(out - ref)))
    assert jnp.allclose(out, ref, atol=1e-3, rtol=1e-3), max_err

    print("KERNEL_OK")
</pallas_src>

<mosaic_0001>
module attributes {stable_mosaic.version = 11 : i64} {
  func.func @_sdpa_kernel(%arg0: i32, %arg1: memref<8x8x32xf32, #tpu.memory_space<vmem>>, %arg2: memref<8x8x32xf32, #tpu.memory_space<vmem>>, %arg3: memref<1x8x256xf32, #tpu.memory_space<vmem>>) attributes {dimension_semantics = [#tpu.dimension_semantics<parallel>], iteration_bounds = array<i64: 1>, scalar_prefetch = 0 : i64, scratch_operands = 0 : i64, tpu.core_type = #tpu.core_type<tc>, window_params = [{transform_indices = @transform_0, window_bounds = array<i64: 8, 8, 32>}, {transform_indices = @transform_1, window_bounds = array<i64: 8, 8, 32>}, {transform_indices = @transform_2, window_bounds = array<i64: 1, 8, 256>}]} {
    %c0 = arith.constant 0 : index
    %c0_0 = arith.constant 0 : index
    %c0_1 = arith.constant 0 : index
    %0 = vector.load %arg1[%c0, %c0_0, %c0_1] : memref<8x8x32xf32, #tpu.memory_space<vmem>>, vector<8x8x32xf32>
    %c0_2 = arith.constant 0 : index
    %c0_3 = arith.constant 0 : index
    %c0_4 = arith.constant 0 : index
    %1 = vector.load %arg2[%c0_2, %c0_3, %c0_4] : memref<8x8x32xf32, #tpu.memory_space<vmem>>, vector<8x8x32xf32>
    %cst = arith.constant dense<0.000000e+00> : vector<8x8x8xf32>
    %2 = tpu.matmul %0, %1, %cst {dimension_numbers = #tpu.dot_dimension_numbers<[2], [2], [1], [1], [0, 0, 0, 1, 1, 1], [0], [0]>} : vector<8x8x32xf32>, vector<8x8x32xf32>, vector<8x8x8xf32> -> vector<8x8x8xf32>
    %cst_5 = arith.constant 0.176776692 : f32
    %3 = vector.broadcast %cst_5 : f32 to vector<8x8x8xf32>
    %4 = arith.mulf %2, %3 : vector<8x8x8xf32>
    %cst_6 = arith.constant dense<0xFF800000> : vector<8x8xf32>
    %5 = vector.multi_reduction <maximumf>, %4, %cst_6 [2] : vector<8x8x8xf32> to vector<8x8xf32>
    %6 = vector.shape_cast %5 : vector<8x8xf32> to vector<8x8x1xf32>
    %7 = vector.broadcast %6 : vector<8x8x1xf32> to vector<8x8x8xf32>
    %8 = arith.subf %4, %7 : vector<8x8x8xf32>
    %9 = math.exp %8 : vector<8x8x8xf32>
    %cst_7 = arith.constant dense<0.000000e+00> : vector<8x8xf32>
    %10 = vector.multi_reduction <add>, %9, %cst_7 [2] : vector<8x8x8xf32> to vector<8x8xf32>
    %11 = vector.shape_cast %10 : vector<8x8xf32> to vector<8x8x1xf32>
    %12 = vector.broadcast %11 : vector<8x8x1xf32> to vector<8x8x8xf32>
    %13 = arith.divf %9, %12 : vector<8x8x8xf32>
    %cst_8 = arith.constant dense<0.000000e+00> : vector<8x8x32xf32>
    %14 = tpu.matmul %13, %1, %cst_8 {dimension_numbers = #tpu.dot_dimension_numbers<[2], [1], [1], [2], [0, 0, 0, 1, 1, 2], [0], [0]>} : vector<8x8x8xf32>, vector<8x8x32xf32>, vector<8x8x32xf32> -> vector<8x8x32xf32>
    %15 = vector.shape_cast %14 : vector<8x8x32xf32> to vector<1x8x256xf32>
    %c0_9 = arith.constant 0 : index
    %c0_10 = arith.constant 0 : index
    %c0_11 = arith.constant 0 : index
    %16 = vector.load %arg3[%c0_9, %c0_10, %c0_11] : memref<1x8x256xf32, #tpu.memory_space<vmem>>, vector<1x8x256xf32>
    tpu.vector_store %arg3[%c0_9, %c0_10, %c0_11], %15 {strides = array<i32>} : memref<1x8x256xf32, #tpu.memory_space<vmem>>, vector<1x8x256xf32>,
    return
  }
  func.func @transform_0(%arg0: i32) -> (i32, i32, i32) {
    %c0_i32 = arith.constant 0 : i32
    %c0_i32_0 = arith.constant 0 : i32
    %c0_i32_1 = arith.constant 0 : i32
    return %arg0, %c0_i32, %c0_i32_0 : i32, i32, i32
  }
  func.func @transform_1(%arg0: i32) -> (i32, i32, i32) {
    %c0_i32 = arith.constant 0 : i32
    %c0_i32_0 = arith.constant 0 : i32
    %c0_i32_1 = arith.constant 0 : i32
    return %arg0, %c0_i32, %c0_i32_0 : i32, i32, i32
  }
  func.func @transform_2(%arg0: i32) -> (i32, i32, i32) {
    %c0_i32 = arith.constant 0 : i32
    %c0_i32_0 = arith.constant 0 : i32
    %c0_i32_1 = arith.constant 0 : i32
    return %arg0, %c0_i32, %c0_i32_0 : i32, i32, i32
  }
}

</mosaic_0001>

<bundles_post_ra>
// kernel: tpu_custom_call.1
= control target key start
LH: loop header
LB: loop body
LE: loop exit
PB: predicated region body
PF: predicated region fallthrough
CT: control target
= control target key end

     0   :  { %7 = vsyncpa [#allocation3], 0  ;;  %s1961_s0 = inlined_call_operand.hbm [shape: f32[8,8,32], index: 0, kind: input, shape index: {}]   ;;  %s1962_s1 = inlined_call_operand.hbm [shape: f32[8,8,32], index: 1, kind: input, shape index: {}]   ;;  %s1963_s2 = inlined_call_operand.hbm [shape: f32[1,8,256], index: 2, kind: output, shape index: {}]  }
   0x1   :  { %8 = vsyncpa [#allocation6], 0 }
   0x2   :  { %9 = vsyncpa [#allocation4], 0  ;;  %s1784_s9 = smov [#allocation2]   ;;  %s1712_s13 = scalar_lea.hbm %s1961_s0, 1024 }
   0x3   :  { %s15_s10 = sshll.u32 %s1784_s9, 4  ;;  %p1713_p0 = scmp.ne.s32.totalorder %s1961_s0, %s1712_s13  ;;  %s16_s10 = int_to_ptr.vmem [resolvable:$true] %s15_s10 }
   0x4   :  { %p1716_p1 = scmp.lt.u32.totalorder %s1712_s13, %s1961_s0 }
   0x6   :  { %p1718_p2 = pnand %p1716_p1, %p1713_p0 }
   0x8   :  { %1721 = shalt.err (!%p1718_p2)
}
   0x9   :  { %s1722_s18 = scalar_lea.vmem %s16_s10, 1024  ;;  %p1727_p4 = scmp.lt.s32.totalorder %s16_s10, %s16_s10 }
   0xa   :  { %p1723_p3 = scmp.ne.s32.totalorder %s16_s10, %s1722_s18  ;;  %p1728_p5 = scmp.lt.s32.totalorder %s1722_s18, %s1722_s18 }
   0xc   :  { %p1729_p6 = por %p1728_p5, %p1727_p4 }
   0xe   :  { %p1730_p7 = pnand %p1729_p6, %p1723_p3 }
  0x10   :  { %1733 = shalt.err (!%p1730_p7)
}
  0x11   :  { %s1785_s19 = smov 128   ;;  %s1786_s20 = smov 8  }
  0x12   :  { %21 = dma.hbm_to_vmem [thread:$0]  %s1961_s0, 1024, %s16_s10, [#allocation3], %s1785_s19, %s1785_s19, %s1786_s20  }
  0x13   :  { %s1787_s23 = smov [#allocation5]   ;;  %s1734_s27 = scalar_lea.hbm %s1962_s1, 1024 }
  0x14   :  { %s27_s24 = sshll.u32 %s1787_s23, 4  ;;  %p1735_p8 = scmp.ne.s32.totalorder %s1962_s1, %s1734_s27  ;;  %s28_s24 = int_to_ptr.vmem [resolvable:$true] %s27_s24 }
  0x15   :  { %p1738_p9 = scmp.lt.u32.totalorder %s1734_s27, %s1962_s1 }
  0x17   :  { %p1740_p10 = pnand %p1738_p9, %p1735_p8 }
  0x19   :  { %1743 = shalt.err (!%p1740_p10)
}
  0x1a   :  { %s1744_s4 = scalar_lea.vmem %s28_s24, 1024  ;;  %p1749_p12 = scmp.lt.s32.totalorder %s28_s24, %s28_s24 }
  0x1b   :  { %p1745_p11 = scmp.ne.s32.totalorder %s28_s24, %s1744_s4  ;;  %p1750_p13 = scmp.lt.s32.totalorder %s1744_s4, %s1744_s4 }
  0x1d   :  { %p1751_p0 = por %p1750_p13, %p1749_p12 }
  0x1f   :  { %p1752_p1 = pnand %p1751_p0, %p1745_p11 }
  0x21   :  { %1755 = shalt.err (!%p1752_p1)
}
  0x22   :  { %33 = dma.hbm_to_vmem [thread:$0]  %s1962_s1, 1024, %s28_s24, [#allocation6], %s1785_s19, %s1785_s19, %s1786_s20  }
  0x23   :  { %1778 = dma.done.wait [#allocation3], 1024  }
  0x24   :  { %1779 = vsyncadd [#allocation3], 4294966272 }
  0x25   :  { %1780 = dma.done.wait [#allocation6], 1024  }
  0x26   :  { %1781 = vsyncadd [#allocation6], 4294966272  ;;  %v1788_v0 = vmov 0.0   ;;  %vm1789_vm0 = vmmov 0   ;;  %vm56_vm1 = vcmask 261120   ;;  %v48_v1 = vld [vmem:[#allocation5] sm:$0xff] }
  0x27   :  { %1588 = vmatprep.subr.mxu0 %v1788_v0  ;;  %1590 = vmatprep.mubr.msk.f32.mxu0 %vm1789_vm0, %v1788_v0  ;;  %v49_v2 = vld [vmem:[#allocation5 + $0x8] sm:$0xff]  ;;  %v40_v3 = vld [vmem:[#allocation2] sm:$0xff]  ;;  %v1844_v5 = vld [vmem:[#allocation5 + $0x10] sm:$0xff]  ;;  %vm673_vm2 = vcmask 64512   ;;  %s1792_s1 = smov 32   ;;  %s1793_s6 = smov 64  }
  0x28   :  { %1593 = vmatprep.subr.mxu1 %v1788_v0  ;;  %1595 = vmatprep.mubr.msk.f32.mxu1 %vm1789_vm0, %v1788_v0  ;;  %v41_v4 = vld [vmem:[#allocation2 + $0x8] sm:$0xff]  ;;  %v1847_v6 = vld [vmem:[#allocation5 + $0x18] sm:$0xff]  ;;  %v42_v7 = vld [vmem:[#allocation2 + $0x10] sm:$0xff]  ;;  %s1794_s7 = smov 96   ;;  %vm1507_vm3 = vcmask 523264   ;;  %vm1509_vm4 = vcmask 785408  }
  0x29   :  { %1589 = vmatpush3.xpose.msk.msra.mxu0 %vm56_vm1, %v48_v1  ;;  %1594 = vmatpush3.xpose.msk.msra.mxu1 %vm56_vm1, %v49_v2  ;;  %v1858_v8 = vld [vmem:[#allocation5 + $0x20] sm:$0xff]  ;;  %v43_v9 = vld [vmem:[#allocation2 + $0x18] sm:$0xff]  ;;  %v1864_v10 = vld [vmem:[#allocation5 + $0x28] sm:$0xff]  ;;  %s1795_s8 = smov [#allocation7]  }
  0x2a   :  { %1598 = vmatprep.subr.mxu0 %v1788_v0  ;;  %1603 = vmatprep.subr.mxu1 %v1788_v0  ;;  %v44_v11 = vld [vmem:[#allocation2 + $0x20] sm:$0xff]  ;;  %v1872_v12 = vld [vmem:[#allocation5 + $0x30] sm:$0xff]  ;;  %v45_v13 = vld [vmem:[#allocation2 + $0x28] sm:$0xff]  ;;  %s1522_s9 = sshll.u32 %s1795_s8, 4  ;;  %s1523_s9 = int_to_ptr.vmem [resolvable:$true] %s1522_s9 }
  0x2b   :  { %v1880_v14 = vld [vmem:[#allocation5 + $0x38] sm:$0xff]  ;;  %v46_v15 = vld [vmem:[#allocation2 + $0x30] sm:$0xff]  ;;  %s1756_s10 = scalar_lea.vmem %s1523_s9, 256  ;;  %p1761_p3 = scmp.lt.s32.totalorder %s1523_s9, %s1523_s9 }
  0x2c   :  { %1591 = vmatmul.mubr.msk.f32.vlgmr.msra.gmra.mrb[0].mxu0 %vm56_vm1, %v40_v3  ;;  %1596 = vmatmul.mubr.msk.f32.vlgmr.msra.gmra.mrb[0].mxu1 %vm56_vm1, %v41_v4  ;;  %v47_v16 = vld [vmem:[#allocation2 + $0x38] sm:$0xff]  ;;  %p1757_p2 = scmp.ne.s32.totalorder %s1523_s9, %s1756_s10  ;;  %p1762_p4 = scmp.lt.s32.totalorder %s1756_s10, %s1756_s10 }
  0x2d   :  { %1599 = vmatpush3.xpose.msk.msra.mxu0 %vm56_vm1, %v1844_v5  ;;  %1600 = vmatprep.mubr.msk.f32.mxu0 %vm1789_vm0, %v1788_v0 }
  0x2e   :  { %1608 = vmatprep.subr.mxu0 %v1788_v0  ;;  %1604 = vmatpush3.xpose.msk.msra.mxu1 %vm56_vm1, %v1847_v6  ;;  %p1763_p5 = por %p1762_p4, %p1761_p3 }
  0x2f   :  { %1605 = vmatprep.mubr.msk.f32.mxu1 %vm1789_vm0, %v1788_v0  ;;  %1613 = vmatprep.subr.mxu1 %v1788_v0 }
  0x30   :  { %1601 = vmatmul.mubr.msk.f32.vlgmr.msra.gmra.mrb[2].mxu0 %vm56_vm1, %v42_v7  ;;  %p1764_p6 = pnand %p1763_p5, %p1757_p2 }
  0x31   :  { %1609 = vmatpush3.xpose.msk.msra.mxu0 %vm56_vm1, %v1858_v8  ;;  %1610 = vmatprep.mubr.msk.f32.mxu0 %vm1789_vm0, %v1788_v0 }
  0x32   :  { %1606 = vmatmul.mubr.msk.f32.vlgmr.msra.gmra.mrb[2].mxu1 %vm56_vm1, %v43_v9  ;;  %1618 = vmatprep.subr.mxu0 %v1788_v0 }
  0x33   :  { %1614 = vmatpush3.xpose.msk.msra.mxu1 %vm56_vm1, %v1864_v10  ;;  %1615 = vmatprep.mubr.msk.f32.mxu1 %vm1789_vm0, %v1788_v0 }
  0x34   :  { %1611 = vmatmul.mubr.msk.f32.vlgmr.msra.gmra.mrb[4].mxu0 %vm56_vm1, %v44_v11  ;;  %1623 = vmatprep.subr.mxu1 %v1788_v0 }
  0x35   :  { %1619 = vmatpush3.xpose.msk.msra.mxu0 %vm56_vm1, %v1872_v12  ;;  %1620 = vmatprep.mubr.msk.f32.mxu0 %vm1789_vm0, %v1788_v0 }
  0x36   :  { %1616 = vmatmul.mubr.msk.f32.vlgmr.msra.gmra.mrb[4].mxu1 %vm56_vm1, %v45_v13  ;;  %1628 = vmatprep.subr.mxu0 %v1788_v0 }
  0x37   :  { %1624 = vmatpush3.xpose.msk.msra.mxu1 %vm56_vm1, %v1880_v14  ;;  %1625 = vmatprep.mubr.msk.f32.mxu1 %vm1789_vm0, %v1788_v0 }
  0x38   :  { %1621 = vmatmul.mubr.msk.f32.vlgmr.msra.gmra.mrb[6].mxu0 %vm56_vm1, %v46_v15  ;;  %1633 = vmatprep.subr.mxu1 %v1788_v0 }
  0x39   :  { %1629 = vmatpush3.msra.mxu0 %v48_v1  ;;  %1630 = vmatprep.mubr.msk.f32.mxu0 %vm1789_vm0, %v1788_v0 }
  0x3a   :  { %1626 = vmatmul.mubr.msk.f32.vlgmr.msra.gmra.mrb[6].mxu1 %vm56_vm1, %v47_v16  ;;  %1638 = vmatprep.subr.mxu0 %v1788_v0 }
  0x3b   :  { %1634 = vmatpush3.msra.mxu1 %v49_v2  ;;  %1635 = vmatprep.mubr.msk.f32.mxu1 %vm1789_vm0, %v1788_v0 }
  0x3c   :  { %1643 = vmatprep.subr.mxu1 %v1788_v0 }
  0xff   :  { %v129_v17 = vpop.f32.mrb[0].mxu0  ;;  %v205_v18 = vpop.f32.mrb[0].mxu1 }
 0x100   :  { %v665_v19 = vmul.f32 0.17677669, %v129_v17  ;;  %v1592_v20 = vpop.f32.mrb[1].mxu0  ;;  %v666_v21 = vmul.f32 0.17677669, %v205_v18  ;;  %v1597_v22 = vpop.f32.mrb[1].mxu1 }
 0x102   :  { %v674_v23 = vsel %vm673_vm2, %v665_v19, -inf  ;;  %v677_v27 = vsel %vm673_vm2, %v666_v21, -inf }
 0x103   :  { %675 = vmax.xlane.f32.xlu0 %v674_v23  ;;  %v281_v24 = vpop.f32.mrb[2].mxu0 }
 0x104   :  { %v667_v25 = vmul.f32 0.17677669, %v281_v24  ;;  %v1602_v26 = vpop.f32.mrb[3].mxu0 }
 0x105   :  { %v357_v28 = vpop.f32.mrb[2].mxu1 }
 0x106   :  { %v668_v29 = vmul.f32 0.17677669, %v357_v28  ;;  %v680_v30 = vsel %vm673_vm2, %v667_v25, -inf  ;;  %v1607_v31 = vpop.f32.mrb[3].mxu1 }
 0x107   :  { %678 = vmax.xlane.f32.xlu0 %v677_v27  ;;  %681 = vmax.xlane.f32.xlu1 %v680_v30  ;;  %v433_v32 = vpop.f32.mrb[4].mxu0 }
 0x108   :  { %v669_v33 = vmul.f32 0.17677669, %v433_v32  ;;  %v1612_v34 = vpop.f32.mrb[5].mxu0  ;;  %v683_v35 = vsel %vm673_vm2, %v668_v29, -inf }
 0x109   :  { %v509_v36 = vpop.f32.mrb[4].mxu1 }
 0x10a   :  { %v670_v37 = vmul.f32 0.17677669, %v509_v36  ;;  %v686_v38 = vsel %vm673_vm2, %v669_v33, -inf  ;;  %v1617_v39 = vpop.f32.mrb[5].mxu1 }
 0x10b   :  { %684 = vmax.xlane.f32.xlu1 %v683_v35  ;;  %687 = vmax.xlane.f32.xlu0 %v686_v38  ;;  %v585_v40 = vpop.f32.mrb[6].mxu0 }
 0x10c   :  { %v671_v41 = vmul.f32 0.17677669, %v585_v40  ;;  %v689_v42 = vsel %vm673_vm2, %v670_v37, -inf  ;;  %v1622_v43 = vpop.f32.mrb[7].mxu0 }
 0x10d   :  { %v661_v44 = vpop.f32.mrb[6].mxu1 }
 0x10e   :  { %v672_v45 = vmul.f32 0.17677669, %v661_v44  ;;  %v692_v46 = vsel %vm673_vm2, %v671_v41, -inf  ;;  %v1627_v47 = vpop.f32.mrb[7].mxu1 }
 0x10f   :  { %690 = vmax.xlane.f32.xlu1 %v689_v42  ;;  %693 = vmax.xlane.f32.xlu0 %v692_v46 }
 0x110   :  { %v695_v48 = vsel %vm673_vm2, %v672_v45, -inf }
 0x113   :  { %696 = vmax.xlane.f32.xlu1 %v695_v48 }
 0x190   :  { %v676_v49 = vpop.xlane.xlu0 %675 }
 0x191   :  { %v698_v50 = vsub.f32 %v665_v19, %v676_v49 }
 0x193   :  { %v706_v51 = vmul.f32 1.442695, %v698_v50 }
 0x194   :  { %v679_v52 = vpop.xlane.xlu0 %678  ;;  %v682_v53 = vpop.xlane.xlu1 %681 }
 0x195   :  { %1680 = vpow2.f32 %v706_v51  ;;  %v699_v54 = vsub.f32 %v666_v21, %v679_v52  ;;  %v700_v55 = vsub.f32 %v667_v25, %v682_v53  ;;  %v1351_v53 = vlaneseq }
 0x197   :  { %v708_v56 = vmul.f32 1.442695, %v699_v54  ;;  %v710_v57 = vmul.f32 1.442695, %v700_v55 }
 0x198   :  { %v685_v58 = vpop.xlane.xlu1 %684  ;;  %v688_v59 = vpop.xlane.xlu0 %687 }
 0x199   :  { %1682 = vpow2.f32 %v708_v56  ;;  %v701_v60 = vsub.f32 %v668_v29, %v685_v58  ;;  %v702_v61 = vsub.f32 %v669_v33, %v688_v59 }
 0x19a   :  { %1684 = vpow2.f32 %v710_v57  ;;  %v1352_v57 = vshrl.u32 %v1351_v53, 7 }
 0x19b   :  { %v712_v62 = vmul.f32 1.442695, %v701_v60  ;;  %v714_v63 = vmul.f32 1.442695, %v702_v61 }
 0x19c   :  { %v691_v1 = vpop.xlane.xlu1 %690  ;;  %v694_v2 = vpop.xlane.xlu0 %693 }
 0x19d   :  { %1686 = vpow2.f32 %v712_v62  ;;  %v703_v3 = vsub.f32 %v670_v37, %v691_v1  ;;  %v704_v4 = vsub.f32 %v671_v41, %v694_v2 }
 0x19e   :  { %1688 = vpow2.f32 %v714_v63 }
 0x19f   :  { %v1681_v7 = vpop.eup %1680  ;;  %v716_v9 = vmul.f32 1.442695, %v703_v3  ;;  %v718_v11 = vmul.f32 1.442695, %v704_v4 }
 0x1a0   :  { %v697_v13 = vpop.xlane.xlu1 %696  ;;  %v722_v15 = vsel %vm673_vm2, %v1681_v7, 0.0 }
 0x1a1   :  { %1690 = vpow2.f32 %v716_v9  ;;  %v705_v16 = vsub.f32 %v672_v45, %v697_v13  ;;  %723 = vadd.xlane.f32.xlu0 %v722_v15  ;;  %v1791_v9 = vmov 1934713408  }
 0x1a2   :  { %1692 = vpow2.f32 %v718_v11  ;;  %v1413_v11 = vunpack.c.l.s4 %v1791_v9 }
 0x1a3   :  { %v1683_v17 = vpop.eup %1682  ;;  %v720_v18 = vmul.f32 1.442695, %v705_v16 }
 0x1a4   :  { %v1685_v19 = vpop.eup %1684  ;;  %v725_v20 = vsel %vm673_vm2, %v1683_v17, 0.0 }
 0x1a5   :  { %1694 = vpow2.f32 %v720_v18  ;;  %726 = vadd.xlane.f32.xlu1 %v725_v20  ;;  %v728_v21 = vsel %vm673_vm2, %v1685_v19, 0.0 }
 0x1a6   :  { %729 = vadd.xlane.f32.xlu0 %v728_v21 }
 0x1a7   :  { %v1687_v22 = vpop.eup %1686 }
 0x1a8   :  { %v1689_v23 = vpop.eup %1688  ;;  %v731_v24 = vsel %vm673_vm2, %v1687_v22, 0.0 }
 0x1a9   :  { %732 = vadd.xlane.f32.xlu1 %v731_v24  ;;  %v734_v25 = vsel %vm673_vm2, %v1689_v23, 0.0 }
 0x1aa   :  { %735 = vadd.xlane.f32.xlu0 %v734_v25 }
 0x1ab   :  { %v1691_v26 = vpop.eup %1690 }
 0x1ac   :  { %v1693_v27 = vpop.eup %1692  ;;  %v737_v28 = vsel %vm673_vm2, %v1691_v26, 0.0 }
 0x1ad   :  { %738 = vadd.xlane.f32.xlu1 %v737_v28  ;;  %v740_v29 = vsel %vm673_vm2, %v1693_v27, 0.0  ;;  %v1414_v28 = vunpack.c.0.s8 %v1413_v11 }
 0x1ae   :  { %741 = vadd.xlane.f32.xlu0 %v740_v29 }
 0x1af   :  { %v1695_v30 = vpop.eup %1694 }
 0x1b0   :  { %v743_v31 = vsel %vm673_vm2, %v1695_v30, 0.0 }
 0x1b1   :  { %744 = vadd.xlane.f32.xlu1 %v743_v31 }
 0x22e   :  { %v724_v32 = vpop.xlane.xlu0 %723 }
 0x22f   :  { %1696 = vrcp.f32 %v724_v32 }
 0x232   :  { %v727_v33 = vpop.xlane.xlu1 %726 }
 0x233   :  { %1698 = vrcp.f32 %v727_v33  ;;  %v730_v34 = vpop.xlane.xlu0 %729  ;;  %v1417_v33 = vsub.s32 %v1414_v28, %v1352_v57 }
 0x234   :  { %1700 = vrcp.f32 %v730_v34 }
 0x236   :  { %v733_v35 = vpop.xlane.xlu1 %732 }
 0x237   :  { %1702 = vrcp.f32 %v733_v35  ;;  %v736_v36 = vpop.xlane.xlu0 %735 }
 0x238   :  { %1704 = vrcp.f32 %v736_v36 }
 0x239   :  { %v1697_v37 = vpop.eup %1696 }
 0x23a   :  { %v747_v38 = vmul.f32 %v1697_v37, %v1681_v7  ;;  %v739_v39 = vpop.xlane.xlu1 %738 }
 0x23b   :  { %1706 = vrcp.f32 %v739_v39  ;;  %v742_v40 = vpop.xlane.xlu0 %741 }
 0x23c   :  { %1708 = vrcp.f32 %v742_v40  ;;  %1631 = vmatmul.mubr.msk.f32.vlgmr.msra.gmra.mrb[8].mxu0 %vm673_vm2, %v747_v38 }
 0x23d   :  { %v1699_v41 = vpop.eup %1698  ;;  %1639 = vmatpush3.msra.mxu0 %v1844_v5  ;;  %1640 = vmatprep.mubr.msk.f32.mxu0 %vm1789_vm0, %v1788_v0 }
 0x23e   :  { %v1701_v42 = vpop.eup %1700  ;;  %v749_v43 = vmul.f32 %v1699_v41, %v1683_v17  ;;  %v745_v44 = vpop.xlane.xlu1 %744  ;;  %1648 = vmatprep.subr.mxu0 %v1788_v0 }
 0x23f   :  { %v751_v45 = vmul.f32 %v1701_v42, %v1685_v19  ;;  %1710 = vrcp.f32 %v745_v44 }
 0x240   :  { %1636 = vmatmul.mubr.msk.f32.vlgmr.msra.gmra.mrb[8].mxu1 %vm673_vm2, %v749_v43 }
 0x241   :  { %v1703_v46 = vpop.eup %1702  ;;  %1641 = vmatmul.mubr.msk.f32.vlgmr.msra.gmra.mrb[10].mxu0 %vm673_vm2, %v751_v45  ;;  %1644 = vmatpush3.msra.mxu1 %v1847_v6 }
 0x242   :  { %v1705_v47 = vpop.eup %1704  ;;  %v753_v48 = vmul.f32 %v1703_v46, %v1687_v22  ;;  %1645 = vmatprep.mubr.msk.f32.mxu1 %vm1789_vm0, %v1788_v0  ;;  %1649 = vmatpush3.msra.mxu0 %v1858_v8 }
 0x243   :  { %v755_v5 = vmul.f32 %v1705_v47, %v1689_v23  ;;  %1650 = vmatprep.mubr.msk.f32.mxu0 %vm1789_vm0, %v1788_v0  ;;  %1653 = vmatprep.subr.mxu1 %v1788_v0 }
 0x244   :  { %1646 = vmatmul.mubr.msk.f32.vlgmr.msra.gmra.mrb[10].mxu1 %vm673_vm2, %v753_v48  ;;  %1658 = vmatprep.subr.mxu0 %v1788_v0 }
 0x245   :  { %v1707_v49 = vpop.eup %1706  ;;  %1651 = vmatmul.mubr.msk.f32.vlgmr.msra.gmra.mrb[12].mxu0 %vm673_vm2, %v755_v5  ;;  %1654 = vmatpush3.msra.mxu1 %v1864_v10 }
 0x246   :  { %v1709_v6 = vpop.eup %1708  ;;  %v757_v50 = vmul.f32 %v1707_v49, %v1691_v26  ;;  %1655 = vmatprep.mubr.msk.f32.mxu1 %vm1789_vm0, %v1788_v0  ;;  %1659 = vmatpush3.msra.mxu0 %v1872_v12  ;;  %v1790_v12 = vmov 1983009808  }
 0x247   :  { %v759_v8 = vmul.f32 %v1709_v6, %v1693_v27  ;;  %1660 = vmatprep.mubr.msk.f32.mxu0 %vm1789_vm0, %v1788_v0  ;;  %1663 = vmatprep.subr.mxu1 %v1788_v0  ;;  %v1349_v52 = vunpack.c.l.s4 %v1790_v12 }
 0x248   :  { %1656 = vmatmul.mubr.msk.f32.vlgmr.msra.gmra.mrb[12].mxu1 %vm673_vm2, %v757_v50 }
 0x249   :  { %v1711_v51 = vpop.eup %1710  ;;  %1661 = vmatmul.mubr.msk.f32.vlgmr.msra.gmra.mrb[14].mxu0 %vm673_vm2, %v759_v8  ;;  %1664 = vmatpush3.msra.mxu1 %v1880_v14  ;;  %v1350_v56 = vunpack.c.0.s8 %v1349_v52 }
 0x24a   :  { %v761_v10 = vmul.f32 %v1711_v51, %v1695_v30  ;;  %1665 = vmatprep.mubr.msk.f32.mxu1 %vm1789_vm0, %v1788_v0 }
 0x24b   :  { %v1353_v14 = vsub.s32 %v1350_v56, %v1352_v57 }
 0x24c   :  { %1666 = vmatmul.mubr.msk.f32.vlgmr.msra.gmra.mrb[14].mxu1 %vm673_vm2, %v761_v10 }
 0x30f   :  { %v831_v54 = vpop.f32.mrb[8].mxu0 }
 0x310   :  { %v1632_v55 = vpop.f32.mrb[9].mxu0 }
 0x313   :  { %v904_v58 = vpop.f32.mrb[8].mxu1 }
 0x314   :  { %v977_v59 = vpop.f32.mrb[10].mxu0  ;;  %v1637_v60 = vpop.f32.mrb[9].mxu1 }
 0x315   :  { %v1346_v61 = vcombine.low %v831_v54, %v977_v59  ;;  %v1347_v62 = vcombine.high %v831_v54, %v977_v59  ;;  %v1642_v63 = vpop.f32.mrb[11].mxu0 }
 0x317   :  { %v1050_v1 = vpop.f32.mrb[10].mxu1  ;;  %v1354_v13 = vrot.slane %v1346_v61, %v1353_v14  ;;  %v1361_v15 = vrot.slane %v1347_v62, %v1353_v14 }
 0x318   :  { %v1362_v2 = vcombine.low %v904_v58, %v1050_v1  ;;  %v1363_v3 = vcombine.high %v904_v58, %v1050_v1  ;;  %v1123_v0 = vpop.f32.mrb[12].mxu0  ;;  %v1647_v4 = vpop.f32.mrb[11].mxu1 }
 0x319   :  { %v1652_v7 = vpop.f32.mrb[13].mxu0 }
 0x31a   :  { %v1370_v16 = vrot.slane %v1362_v2, %v1353_v14  ;;  %v1377_v17 = vrot.slane %v1363_v3, %v1353_v14 }
 0x31b   :  { %v1196_v18 = vpop.f32.mrb[12].mxu1 }
 0x31c   :  { %v1410_v19 = vcombine.low %v1354_v13, %v1370_v16  ;;  %v1411_v20 = vcombine.high %v1354_v13, %v1370_v16  ;;  %v1426_v21 = vcombine.low %v1361_v15, %v1377_v17  ;;  %v1427_v22 = vcombine.high %v1361_v15, %v1377_v17  ;;  %v1269_v23 = vpop.f32.mrb[14].mxu0  ;;  %v1657_v24 = vpop.f32.mrb[13].mxu1 }
 0x31d   :  { %v1378_v25 = vcombine.low %v1123_v0, %v1269_v23  ;;  %v1379_v26 = vcombine.high %v1123_v0, %v1269_v23  ;;  %v1662_v27 = vpop.f32.mrb[15].mxu0 }
 0x31e   :  { %v1434_v42 = vrot.slane %v1426_v21, %v1417_v33  ;;  %v1418_v43 = vrot.slane %v1410_v19, %v1417_v33  ;;  %v1425_v44 = vrot.slane %v1411_v20, %v1417_v33  ;;  %v1441_v5 = vrot.slane %v1427_v22, %v1417_v33 }
 0x31f   :  { %v1342_v29 = vpop.f32.mrb[14].mxu1  ;;  %v1386_v34 = vrot.slane %v1378_v25, %v1353_v14  ;;  %v1393_v35 = vrot.slane %v1379_v26, %v1353_v14 }
 0x320   :  { %v1394_v30 = vcombine.low %v1196_v18, %v1342_v29  ;;  %v1395_v31 = vcombine.high %v1196_v18, %v1342_v29  ;;  %v1667_v32 = vpop.f32.mrb[15].mxu1 }
 0x322   :  { %v1402_v36 = vrot.slane %v1394_v30, %v1353_v14  ;;  %v1409_v37 = vrot.slane %v1395_v31, %v1353_v14 }
 0x324   :  { %v1442_v38 = vcombine.low %v1386_v34, %v1402_v36  ;;  %v1443_v39 = vcombine.high %v1386_v34, %v1402_v36  ;;  %v1458_v40 = vcombine.low %v1393_v35, %v1409_v37  ;;  %v1459_v41 = vcombine.high %v1393_v35, %v1409_v37 }
 0x326   :  { %v1466_v45 = vrot.slane %v1458_v40, %v1417_v33  ;;  %v1450_v46 = vrot.slane %v1442_v38, %v1417_v33  ;;  %v1457_v47 = vrot.slane %v1443_v39, %v1417_v33  ;;  %v1473_v48 = vrot.slane %v1459_v41, %v1417_v33 }
 0x328   :  { %v1479_v49 = vcombine.high %v1434_v42, %v1466_v45  ;;  %v1475_v6 = vcombine.high %v1418_v43, %v1450_v46  ;;  %v1476_v50 = vcombine.low %v1425_v44, %v1457_v47  ;;  %v1477_v8 = vcombine.high %v1425_v44, %v1457_v47 }
 0x329   :  { %v1480_v51 = vcombine.low %v1441_v5, %v1473_v48  ;;  %v1481_v10 = vcombine.high %v1441_v5, %v1473_v48  ;;  %v1478_v12 = vcombine.low %v1434_v42, %v1466_v45  ;;  %v1474_v52 = vcombine.low %v1418_v43, %v1450_v46 }
 0x32a   :  { %1495 = vrot.lane.b32.xlu1 %v1479_v49, %s1792_s1  ;;  %1483 = vrot.lane.b32.xlu0 %v1475_v6, %s1792_s1 }
 0x32e   :  { %1487 = vrot.lane.b32.xlu1 %v1476_v50, %s1793_s6  ;;  %1491 = vrot.lane.b32.xlu0 %v1477_v8, %s1794_s7 }
 0x332   :  { %1499 = vrot.lane.b32.xlu1 %v1480_v51, %s1793_s6 }
 0x336   :  { %1503 = vrot.lane.b32.xlu1 %v1481_v10, %s1794_s7 }
 0x39c   :  { %v1496_v53 = vpop.permute.xlu1 %1495  ;;  %v1484_v54 = vpop.permute.xlu0 %1483 }
 0x39d   :  { %v1506_v55 = vsel %vm56_vm1, %v1474_v52, %v1484_v54  ;;  %v1511_v61 = vsel %vm56_vm1, %v1478_v12, %v1496_v53 }
 0x3a0   :  { %v1488_v56 = vpop.permute.xlu1 %1487  ;;  %v1492_v57 = vpop.permute.xlu0 %1491 }
 0x3a1   :  { %v1508_v58 = vsel %vm1507_vm3, %v1506_v55, %v1488_v56 }
 0x3a2   :  { %v1510_v59 = vsel %vm1509_vm4, %v1508_v58, %v1492_v57 }
 0x3a3   :  { %1514 = vst [vmem:[#allocation7] sm:$0xff] %v1510_v59 }
 0x3a4   :  { %v1500_v60 = vpop.permute.xlu1 %1499 }
 0x3a5   :  { %v1512_v62 = vsel %vm1507_vm3, %v1511_v61, %v1500_v60 }
 0x3a8   :  { %v1504_v63 = vpop.permute.xlu1 %1503 }
 0x3a9   :  { %v1513_v14 = vsel %vm1509_vm4, %v1512_v62, %v1504_v63 }
 0x3aa   :  { %1515 = vst [vmem:[#allocation7 + $0x8] sm:$0xff] %v1513_v14 }
 0x3ab   :  { %1767 = shalt.err (!%p1764_p6)
}
 0x3ac   :  { %s1768_s13 = scalar_lea.hbm %s1963_s2, 256 }
 0x3ad   :  { %p1769_p7 = scmp.ne.s32.totalorder %s1963_s2, %s1768_s13  ;;  %p1772_p8 = scmp.lt.u32.totalorder %s1768_s13, %s1963_s2 }
 0x3af   :  { %p1774_p9 = pnand %p1772_p8, %p1769_p7 }
 0x3b1   :  { %1777 = shalt.err (!%p1774_p9)
}
 0x3b2   :  { %1525 = dma.vmem_to_hbm [thread:$0]  %s1523_s9, 256, %s1963_s2, [#allocation4]  }
 0x3b3   :  { %1782 = dma.done.wait [#allocation4], 256  }
 0x3b4   :  { %1783 = vsyncadd [#allocation4], 4294967040 }
 0x3b5   :  { %1529 = vsyncpa [#allocation3], 1 }
 0x3b6   :  { %1530 = vsyncpa [#allocation6], 1 }
 0x3b7   :  { %1531 = vsyncpa [#allocation4], 1 }

</bundles_post_ra>
